<compile_context>
chip_gen: v7x
topology: tpu7x:2x2x1
jax: 0.10.0
libtpu: 0.0.40
codegen_flags: <defaults>
</compile_context>

<pallas_src>
import functools

import jax
import jax.numpy as jnp
from jax.experimental import pallas as pl
from jax.experimental.pallas import tpu as pltpu


def resblock_kernel(x_pad_ref, w1b_ref, b1_ref, w2b_ref, b2_ref, alpha_ref,
                    out_ref, *, H, K, res_scale):
    """One batch element per grid step.

    x_pad_ref : (1, H + 4P, W*C)   input slab, row-padded by 2P on each side
    w1b_ref   : (K, W*C, W*C)      banded conv1 weights (W-padding folded in)
    b1_ref    : (1, W*C)
    w2b_ref   : (K, W*C, W*C)      banded conv2 weights
    b2_ref    : (1, W*C)
    alpha_ref : (1, 1) in SMEM     shared PReLU slope
    out_ref   : (1, H, W*C)        lane-dense output slab
    """
    P = K // 2
    Hh = H + 2 * P                       # rows of h including a P-row halo
    WC = out_ref.shape[-1]

    xin = x_pad_ref[0]                   # (H + 4P, WC), loaded once

    # ---- conv1 over the extended (halo) row range: K banded matmuls ----
    # Static Python unroll keeps the taps visible to the LLO scheduler.
    acc1 = jnp.zeros((Hh, WC), jnp.float32)
    for dy in range(K):
        acc1 += jnp.dot(xin[dy:dy + Hh, :], w1b_ref[dy],
                        preferred_element_type=jnp.float32)
    acc1 += b1_ref[...]                  # (1, WC) broadcast over rows

    # ---- PReLU (single shared alpha = nn.PReLU() default) ----
    alpha = alpha_ref[0, 0]
    h = jnp.where(acc1 >= 0, acc1, alpha * acc1)

    # ---- zero the halo rows: this IS the SAME zero padding conv2 needs ----
    row = jax.lax.broadcasted_iota(jnp.int32, (Hh, WC), 0)
    h = jnp.where((row >= P) & (row < P + H), h, 0.0)

    # ---- conv2: K banded matmuls on register-resident h (no scratch) ----
    acc2 = jnp.zeros((H, WC), jnp.float32)
    for dy in range(K):
        acc2 += jnp.dot(h[dy:dy + H, :], w2b_ref[dy],
                        preferred_element_type=jnp.float32)
    acc2 += b2_ref[...]

    # ---- residual: res * res_scale + x (x read from padded-input interior) ----
    res = acc2 * res_scale + xin[2 * P:2 * P + H, :].astype(jnp.float32)
    out_ref[0] = res.astype(out_ref.dtype)


def _band_weights(w, W):
    """(K, K, Cin, Cout) conv weights -> (K, W*Cin, W*Cout) banded matrices.

    Wb[dy, xi*Cin + ci, xo*Cout + co] = w[dy, xi - xo + P, ci, co]
    when 0 <= xi - xo + P < K, else 0.   (SAME zero-padding along W is
    implicit: out-of-range taps simply have no band entry.)
    """
    K, _, Ci, Co = w.shape
    P = K // 2
    xi = jnp.arange(W)
    xo = jnp.arange(W)
    dx = xi[:, None] - xo[None, :] + P                    # (W_in, W_out)
    valid = (dx >= 0) & (dx < K)
    dx_c = jnp.clip(dx, 0, K - 1)
    wg = w[:, dx_c]                                       # (K, W_in, W_out, Ci, Co)
    wg = jnp.where(valid[None, :, :, None, None], wg, jnp.zeros([], w.dtype))
    return wg.transpose(0, 1, 3, 2, 4).reshape(K, W * Ci, W * Co)


def resblock(x, w1, b1, w2, b2, alpha, *, res_scale=1.0):
    """x: (N, H, W, C) NHWC; w: (K, K, Cin, Cout) HWIO; b: (C,); alpha: (1,1)."""
    N, H, W, C = x.shape
    K = w1.shape[0]
    P = K // 2
    WC = W * C                      # lane dim of all slabs (128 for the test)
    Hpp = H + 4 * P                 # input rows incl. halo for conv1-on-halo

    # Lane-dense slab layout: merge (W, C) into the last (lane) dimension.
    x_slab = x.reshape(N, H, WC)
    x_pad = jnp.pad(x_slab, ((0, 0), (2 * P, 2 * P), (0, 0)))   # rows only

    # Fold the W-direction taps + SAME padding into banded weight matrices.
    w1b = _band_weights(w1, W)
    w2b = _band_weights(w2, W)
    b1s = jnp.tile(b1.reshape(-1), W).reshape(1, WC)
    b2s = jnp.tile(b2.reshape(-1), W).reshape(1, WC)
    alpha = jnp.asarray(alpha, jnp.float32).reshape(1, 1)

    kernel = functools.partial(resblock_kernel, H=H, K=K, res_scale=res_scale)

    # Advisory cost estimate (logical conv FLOPs + main byte traffic).
    flops = N * 2 * (2 * H * W * K * K * C * C)
    bytes_accessed = 4 * (x_pad.size + N * H * WC
                          + 2 * K * WC * WC + 2 * WC + 1)

    out_slab = pl.pallas_call(
        kernel,
        out_shape=jax.ShapeDtypeStruct((N, H, WC), x.dtype),
        grid_spec=pltpu.PrefetchScalarGridSpec(
            num_scalar_prefetch=0,
            grid=(N,),
            in_specs=[
                pl.BlockSpec((1, Hpp, WC), lambda n: (n, 0, 0)),   # padded x slab
                pl.BlockSpec((K, WC, WC), lambda n: (0, 0, 0)),    # banded w1
                pl.BlockSpec((1, WC), lambda n: (0, 0)),           # b1 slab
                pl.BlockSpec((K, WC, WC), lambda n: (0, 0, 0)),    # banded w2
                pl.BlockSpec((1, WC), lambda n: (0, 0)),           # b2 slab
                pl.BlockSpec((1, 1), lambda n: (0, 0),
                             memory_space=pltpu.MemorySpace.SMEM), # PReLU alpha
            ],
            out_specs=pl.BlockSpec((1, H, WC), lambda n: (n, 0, 0)),
        ),
        compiler_params=pltpu.CompilerParams(
            dimension_semantics=("parallel",)),      # batch is independent work
        cost_estimate=pl.CostEstimate(flops=flops, transcendentals=0,
                                      bytes_accessed=bytes_accessed),
    )(x_pad, w1b, b1s, w2b, b2s, alpha)

    return out_slab.reshape(N, H, W, C)


def resblock_ref(x, w1, b1, w2, b2, alpha, *, res_scale=1.0):
    """Pure-JAX reference (NHWC / HWIO convolutions)."""
    dn = jax.lax.conv_dimension_numbers(x.shape, w1.shape, ("NHWC", "HWIO", "NHWC"))
    h = jax.lax.conv_general_dilated(x, w1, (1, 1), "SAME",
                                     dimension_numbers=dn) + b1.reshape(1, 1, 1, -1)
    h = jnp.where(h >= 0, h, alpha.reshape(()) * h)
    y = jax.lax.conv_general_dilated(h, w2, (1, 1), "SAME",
                                     dimension_numbers=dn) + b2.reshape(1, 1, 1, -1)
    return y * res_scale + x


if __name__ == "__main__":
    # Shapes consistent with ResBlock(conv, n_feats=8, kernel_size=3).
    # W * C = 16 * 8 = 128 -> lane-dense slabs.
    N, H, W, C = 2, 16, 16, 8
    K = 3
    res_scale = 1.0

    key = jax.random.PRNGKey(0)
    kx, k1, k2, k3, k4 = jax.random.split(key, 5)

    x = jax.random.normal(kx, (N, H, W, C), jnp.float32)
    w1 = jax.random.normal(k1, (K, K, C, C), jnp.float32) * 0.1
    b1 = jax.random.normal(k2, (C,), jnp.float32) * 0.1
    w2 = jax.random.normal(k3, (K, K, C, C), jnp.float32) * 0.1
    b2 = jax.random.normal(k4, (C,), jnp.float32) * 0.1
    alpha = jnp.full((1, 1), 0.25, jnp.float32)   # nn.PReLU() default init

    out = resblock(x, w1, b1, w2, b2, alpha, res_scale=res_scale)
    out = jax.block_until_ready(out)

    ref = resblock_ref(x, w1, b1, w2, b2, alpha, res_scale=res_scale)
    assert out.shape == (N, H, W, C)
    err = jnp.max(jnp.abs(out - ref))
    assert jnp.allclose(out, ref, rtol=1e-4, atol=1e-4), f"max abs err = {err}"

    print("KERNEL_OK")
</pallas_src>

<mosaic_0001>
module attributes {stable_mosaic.version = 11 : i64} {
  func.func @resblock_kernel(%arg0: i32, %arg1: memref<1x20x128xf32, #tpu.memory_space<vmem>>, %arg2: memref<3x128x128xf32, #tpu.memory_space<vmem>>, %arg3: memref<1x128xf32, #tpu.memory_space<vmem>>, %arg4: memref<3x128x128xf32, #tpu.memory_space<vmem>>, %arg5: memref<1x128xf32, #tpu.memory_space<vmem>>, %arg6: memref<1x1xf32, #tpu.memory_space<smem>>, %arg7: memref<1x16x128xf32, #tpu.memory_space<vmem>>) attributes {dimension_semantics = [#tpu.dimension_semantics<parallel>], iteration_bounds = array<i64: 2>, scalar_prefetch = 0 : i64, scratch_operands = 0 : i64, tpu.core_type = #tpu.core_type<tc>, window_params = [{transform_indices = @transform_0, window_bounds = array<i64: 1, 20, 128>}, {pipeline_mode = #tpu.pipeline_mode<synchronous>, transform_indices = @transform_1, window_bounds = array<i64: 3, 128, 128>}, {pipeline_mode = #tpu.pipeline_mode<synchronous>, transform_indices = @transform_2, window_bounds = array<i64: 1, 128>}, {pipeline_mode = #tpu.pipeline_mode<synchronous>, transform_indices = @transform_3, window_bounds = array<i64: 3, 128, 128>}, {pipeline_mode = #tpu.pipeline_mode<synchronous>, transform_indices = @transform_4, window_bounds = array<i64: 1, 128>}, {transform_indices = @transform_5, window_bounds = array<i64: 1, 1>}, {transform_indices = @transform_6, window_bounds = array<i64: 1, 16, 128>}]} {
    %c0 = arith.constant 0 : index
    %c0_0 = arith.constant 0 : index
    %c0_1 = arith.constant 0 : index
    %0 = vector.load %arg1[%c0, %c0_0, %c0_1] : memref<1x20x128xf32, #tpu.memory_space<vmem>>, vector<1x20x128xf32>
    %1 = vector.shape_cast %0 : vector<1x20x128xf32> to vector<20x128xf32>
    %cst = arith.constant 0.000000e+00 : f32
    %2 = vector.broadcast %cst : f32 to vector<18x128xf32>
    %3 = vector.extract_strided_slice %1 {offsets = [0, 0], sizes = [18, 128], strides = [1, 1]} : vector<20x128xf32> to vector<18x128xf32>
    %c0_2 = arith.constant 0 : index
    %c0_3 = arith.constant 0 : index
    %c0_4 = arith.constant 0 : index
    %4 = vector.load %arg2[%c0_2, %c0_3, %c0_4] : memref<3x128x128xf32, #tpu.memory_space<vmem>>, vector<1x128x128xf32>
    %5 = vector.shape_cast %4 : vector<1x128x128xf32> to vector<128x128xf32>
    %cst_5 = arith.constant dense<0.000000e+00> : vector<18x128xf32>
    %6 = tpu.matmul %3, %5, %cst_5 {dimension_numbers = #tpu.dot_dimension_numbers<[1], [0], [0], [1], [0, 0, 1, 1], [], []>} : vector<18x128xf32>, vector<128x128xf32>, vector<18x128xf32> -> vector<18x128xf32>
    %7 = arith.addf %2, %6 : vector<18x128xf32>
    %8 = vector.extract_strided_slice %1 {offsets = [1, 0], sizes = [18, 128], strides = [1, 1]} : vector<20x128xf32> to vector<18x128xf32>
    %c1 = arith.constant 1 : index
    %c0_6 = arith.constant 0 : index
    %c0_7 = arith.constant 0 : index
    %9 = vector.load %arg2[%c1, %c0_6, %c0_7] : memref<3x128x128xf32, #tpu.memory_space<vmem>>, vector<1x128x128xf32>
    %10 = vector.shape_cast %9 : vector<1x128x128xf32> to vector<128x128xf32>
    %cst_8 = arith.constant dense<0.000000e+00> : vector<18x128xf32>
    %11 = tpu.matmul %8, %10, %cst_8 {dimension_numbers = #tpu.dot_dimension_numbers<[1], [0], [0], [1], [0, 0, 1, 1], [], []>} : vector<18x128xf32>, vector<128x128xf32>, vector<18x128xf32> -> vector<18x128xf32>
    %12 = arith.addf %7, %11 : vector<18x128xf32>
    %13 = vector.extract_strided_slice %1 {offsets = [2, 0], sizes = [18, 128], strides = [1, 1]} : vector<20x128xf32> to vector<18x128xf32>
    %c2 = arith.constant 2 : index
    %c0_9 = arith.constant 0 : index
    %c0_10 = arith.constant 0 : index
    %14 = vector.load %arg2[%c2, %c0_9, %c0_10] : memref<3x128x128xf32, #tpu.memory_space<vmem>>, vector<1x128x128xf32>
    %15 = vector.shape_cast %14 : vector<1x128x128xf32> to vector<128x128xf32>
    %cst_11 = arith.constant dense<0.000000e+00> : vector<18x128xf32>
    %16 = tpu.matmul %13, %15, %cst_11 {dimension_numbers = #tpu.dot_dimension_numbers<[1], [0], [0], [1], [0, 0, 1, 1], [], []>} : vector<18x128xf32>, vector<128x128xf32>, vector<18x128xf32> -> vector<18x128xf32>
    %17 = arith.addf %12, %16 : vector<18x128xf32>
    %c0_12 = arith.constant 0 : index
    %c0_13 = arith.constant 0 : index
    %18 = vector.load %arg3[%c0_12, %c0_13] : memref<1x128xf32, #tpu.memory_space<vmem>>, vector<1x128xf32>
    %19 = vector.broadcast %18 : vector<1x128xf32> to vector<18x128xf32>
    %20 = arith.addf %17, %19 : vector<18x128xf32>
    %c0_14 = arith.constant 0 : index
    %c0_15 = arith.constant 0 : index
    %21 = memref.load %arg6[%c0_14, %c0_15] : memref<1x1xf32, #tpu.memory_space<smem>>
    %cst_16 = arith.constant 0.000000e+00 : f32
    %22 = vector.broadcast %cst_16 : f32 to vector<18x128xf32>
    %23 = arith.cmpf oge, %20, %22 : vector<18x128xf32>
    %24 = vector.broadcast %21 : f32 to vector<18x128xf32>
    %25 = arith.mulf %24, %20 : vector<18x128xf32>
    %26 = arith.select %23, %20, %25 : vector<18x128xi1>, vector<18x128xf32>
    %27 = tpu.iota {dimensions = array<i32: 0>} : vector<18x128xi32>
    %c1_i32 = arith.constant 1 : i32
    %28 = vector.broadcast %c1_i32 : i32 to vector<18x128xi32>
    %29 = arith.cmpi sge, %27, %28 : vector<18x128xi32>
    %c17_i32 = arith.constant 17 : i32
    %30 = vector.broadcast %c17_i32 : i32 to vector<18x128xi32>
    %31 = arith.cmpi slt, %27, %30 : vector<18x128xi32>
    %32 = arith.andi %29, %31 : vector<18x128xi1>
    %cst_17 = arith.constant 0.000000e+00 : f32
    %33 = vector.broadcast %cst_17 : f32 to vector<18x128xf32>
    %34 = arith.select %32, %26, %33 : vector<18x128xi1>, vector<18x128xf32>
    %cst_18 = arith.constant 0.000000e+00 : f32
    %35 = vector.broadcast %cst_18 : f32 to vector<16x128xf32>
    %36 = vector.extract_strided_slice %34 {offsets = [0, 0], sizes = [16, 128], strides = [1, 1]} : vector<18x128xf32> to vector<16x128xf32>
    %c0_19 = arith.constant 0 : index
    %c0_20 = arith.constant 0 : index
    %c0_21 = arith.constant 0 : index
    %37 = vector.load %arg4[%c0_19, %c0_20, %c0_21] : memref<3x128x128xf32, #tpu.memory_space<vmem>>, vector<1x128x128xf32>
    %38 = vector.shape_cast %37 : vector<1x128x128xf32> to vector<128x128xf32>
    %cst_22 = arith.constant dense<0.000000e+00> : vector<16x128xf32>
    %39 = tpu.matmul %36, %38, %cst_22 {dimension_numbers = #tpu.dot_dimension_numbers<[1], [0], [0], [1], [0, 0, 1, 1], [], []>} : vector<16x128xf32>, vector<128x128xf32>, vector<16x128xf32> -> vector<16x128xf32>
    %40 = arith.addf %35, %39 : vector<16x128xf32>
    %41 = vector.extract_strided_slice %34 {offsets = [1, 0], sizes = [16, 128], strides = [1, 1]} : vector<18x128xf32> to vector<16x128xf32>
    %c1_23 = arith.constant 1 : index
    %c0_24 = arith.constant 0 : index
    %c0_25 = arith.constant 0 : index
    %42 = vector.load %arg4[%c1_23, %c0_24, %c0_25] : memref<3x128x128xf32, #tpu.memory_space<vmem>>, vector<1x128x128xf32>
    %43 = vector.shape_cast %42 : vector<1x128x128xf32> to vector<128x128xf32>
    %cst_26 = arith.constant dense<0.000000e+00> : vector<16x128xf32>
    %44 = tpu.matmul %41, %43, %cst_26 {dimension_numbers = #tpu.dot_dimension_numbers<[1], [0], [0], [1], [0, 0, 1, 1], [], []>} : vector<16x128xf32>, vector<128x128xf32>, vector<16x128xf32> -> vector<16x128xf32>
    %45 = arith.addf %40, %44 : vector<16x128xf32>
    %46 = vector.extract_strided_slice %34 {offsets = [2, 0], sizes = [16, 128], strides = [1, 1]} : vector<18x128xf32> to vector<16x128xf32>
    %c2_27 = arith.constant 2 : index
    %c0_28 = arith.constant 0 : index
    %c0_29 = arith.constant 0 : index
    %47 = vector.load %arg4[%c2_27, %c0_28, %c0_29] : memref<3x128x128xf32, #tpu.memory_space<vmem>>, vector<1x128x128xf32>
    %48 = vector.shape_cast %47 : vector<1x128x128xf32> to vector<128x128xf32>
    %cst_30 = arith.constant dense<0.000000e+00> : vector<16x128xf32>
    %49 = tpu.matmul %46, %48, %cst_30 {dimension_numbers = #tpu.dot_dimension_numbers<[1], [0], [0], [1], [0, 0, 1, 1], [], []>} : vector<16x128xf32>, vector<128x128xf32>, vector<16x128xf32> -> vector<16x128xf32>
    %50 = arith.addf %45, %49 : vector<16x128xf32>
    %c0_31 = arith.constant 0 : index
    %c0_32 = arith.constant 0 : index
    %51 = vector.load %arg5[%c0_31, %c0_32] : memref<1x128xf32, #tpu.memory_space<vmem>>, vector<1x128xf32>
    %52 = vector.broadcast %51 : vector<1x128xf32> to vector<16x128xf32>
    %53 = arith.addf %50, %52 : vector<16x128xf32>
    %cst_33 = arith.constant 1.000000e+00 : f32
    %54 = vector.broadcast %cst_33 : f32 to vector<16x128xf32>
    %55 = arith.mulf %53, %54 : vector<16x128xf32>
    %56 = vector.extract_strided_slice %1 {offsets = [2, 0], sizes = [16, 128], strides = [1, 1]} : vector<20x128xf32> to vector<16x128xf32>
    %57 = arith.addf %55, %56 : vector<16x128xf32>
    %c0_34 = arith.constant 0 : index
    %c0_35 = arith.constant 0 : index
    %c0_36 = arith.constant 0 : index
    %58 = vector.load %arg7[%c0_34, %c0_35, %c0_36] : memref<1x16x128xf32, #tpu.memory_space<vmem>>, vector<1x16x128xf32>
    %59 = vector.shape_cast %58 : vector<1x16x128xf32> to vector<16x128xf32>
    %60 = vector.shape_cast %57 : vector<16x128xf32> to vector<1x16x128xf32>
    tpu.vector_store %arg7[%c0_34, %c0_35, %c0_36], %60 {strides = array<i32>} : memref<1x16x128xf32, #tpu.memory_space<vmem>>, vector<1x16x128xf32>,
    return
  }
  func.func @transform_0(%arg0: i32) -> (i32, i32, i32) {
    %c0_i32 = arith.constant 0 : i32
    %c0_i32_0 = arith.constant 0 : i32
    %c0_i32_1 = arith.constant 0 : i32
    return %arg0, %c0_i32, %c0_i32_0 : i32, i32, i32
  }
  func.func @transform_1(%arg0: i32) -> (i32, i32, i32) {
    %c0_i32 = arith.constant 0 : i32
    %c0_i32_0 = arith.constant 0 : i32
    %c0_i32_1 = arith.constant 0 : i32
    %c0_i32_2 = arith.constant 0 : i32
    return %c0_i32, %c0_i32_0, %c0_i32_1 : i32, i32, i32
  }
  func.func @transform_2(%arg0: i32) -> (i32, i32) {
    %c0_i32 = arith.constant 0 : i32
    %c0_i32_0 = arith.constant 0 : i32
    %c0_i32_1 = arith.constant 0 : i32
    return %c0_i32, %c0_i32_0 : i32, i32
  }
  func.func @transform_3(%arg0: i32) -> (i32, i32, i32) {
    %c0_i32 = arith.constant 0 : i32
    %c0_i32_0 = arith.constant 0 : i32
    %c0_i32_1 = arith.constant 0 : i32
    %c0_i32_2 = arith.constant 0 : i32
    return %c0_i32, %c0_i32_0, %c0_i32_1 : i32, i32, i32
  }
  func.func @transform_4(%arg0: i32) -> (i32, i32) {
    %c0_i32 = arith.constant 0 : i32
    %c0_i32_0 = arith.constant 0 : i32
    %c0_i32_1 = arith.constant 0 : i32
    return %c0_i32, %c0_i32_0 : i32, i32
  }
  func.func @transform_5(%arg0: i32) -> (i32, i32) {
    %c0_i32 = arith.constant 0 : i32
    %c0_i32_0 = arith.constant 0 : i32
    %c0_i32_1 = arith.constant 0 : i32
    return %c0_i32, %c0_i32_0 : i32, i32
  }
  func.func @transform_6(%arg0: i32) -> (i32, i32, i32) {
    %c0_i32 = arith.constant 0 : i32
    %c0_i32_0 = arith.constant 0 : i32
    %c0_i32_1 = arith.constant 0 : i32
    return %arg0, %c0_i32, %c0_i32_0 : i32, i32, i32
  }
}

</mosaic_0001>

<bundles_post_ra>
// kernel: tpu_custom_call.1
= control target key start
LH: loop header
LB: loop body
LE: loop exit
PB: predicated region body
PF: predicated region fallthrough
CT: control target
= control target key end

     0   :  { %s2072_s0 = inlined_call_operand.vmem [shape: f32[2,20,128], index: 0, kind: input, shape index: {}]   ;;  %s2073_s1 = inlined_call_operand.hbm [shape: f32[3,128,128], index: 1, kind: input, shape index: {}]   ;;  %s2074_s2 = inlined_call_operand.vmem [shape: f32[1,128], index: 2, kind: input, shape index: {}]   ;;  %s2075_s3 = inlined_call_operand.hbm [shape: f32[3,128,128], index: 3, kind: input, shape index: {}]   ;;  %s2076_s4 = inlined_call_operand.vmem [shape: f32[1,128], index: 4, kind: input, shape index: {}]   ;;  %s2077_s5 = inlined_call_operand.<no memory space> [shape: f32[1,1], index: 5, kind: input, shape index: {}]   ;;  %s2078_s6 = inlined_call_operand.hbm [shape: f32[2,16,128], index: 6, kind: output, shape index: {}]  }
   0x1   :  { %11 = sst [smem:[#allocation2]] %s2077_s5 }
   0x2   :  { %12 = vsyncpa [#allocation4], 0 }
   0x3   :  { %13 = vsyncpa [#allocation7], 0 }
   0x4   :  { %14 = vsyncpa [#allocation5], 0 }
   0x5   :  { %16 = vsyncpa [#allocation5 + $0x1], 0  ;;  %s1814_s23 = smov 0   ;;  %s1816_s24 = smov 0  }
   0x6   :  { %s1818_s25 = smov 0   ;;  %s1820_s26 = smov 0  }
   0x7 LB: > { %s1835_s5 = sadd.s32 4294967295, %s1764_s26   ;;  %s1040_s27 = sadd.s32 4294967294, %s1764_s26   ;;  %s1764_s26 = sphi %s1820_s26, %s2096_s26   ;;  %s1760_s25 = sphi %s1818_s25, %s2095_s25   ;;  %s1756_s24 = sphi %s1816_s24, %s2094_s24   ;;  %s1752_s23 = sphi %s1814_s23, %s2093_s23  }
   0x8   : > { %s1839_s28 = sadd.s32 1, %s1764_s26   ;;  %s160_s29 = sadd.s32 1, %s1760_s25 }
   0x9   : > { %s157_s30 = ssub.s32 %s1764_s26, %s1839_s28  ;;  %p170_p0 = scmp.ne.s32.totalorder %s1760_s25, %s1756_s24 }
   0xa   : > { %p158_p1 = scmp.eq.s32.totalorder %s157_s30, 0  ;;  %p171_p2 = scmp.eq.s32.totalorder %s1835_s5, 1 }
   0xb   : > { %p176_p3 = scmp.ne.s32.totalorder %s1756_s24, %s1752_s23  ;;  %p177_p4 = scmp.eq.s32.totalorder %s1040_s27, 1 }
   0xc   : > { %s1850_s7 = scalar_select %p158_p1, %s1760_s25, %s160_s29  }
   0xd   : > { %p1852_p5 = por %p171_p2, %p170_p0  ;;  %p1856_p6 = por %p177_p4, %p176_p3 }
   0xe   : > { %p1041_p7 = scmp.ge.s32.totalorder %s1764_s26, 1  ;;  %p184_p8 = scmp.lt.s32.totalorder %s1764_s26, 3 }
   0xf   : > { %s2082_s8 = scalar_select %p1852_p5, 1, 0 }
  0x10   : > { %s2083_s9 = scalar_select %p1856_p6, 1, 0 }
  0x11   : > { %p2079_p9 = scmp.eq.s32.totalorder %s1835_s5, 0  ;;  %p1863_p10 = pnand %p1041_p7, %p184_p8 }
  0x12   : > { %s1766_s11 = smov [#allocation3]   ;;  %s1767_s14 = smov [#allocation6]  }
  0x13   : > { %s2084_s10 = scalar_select %p1863_p10, 1, 0 }
  0x14   : > { %s196_s12 = sshll.u32 %s1766_s11, 4  ;;  %p1581_p11 = pneg %p1863_p10  ;;  %s197_s12 = int_to_ptr.vmem [resolvable:$true] %s196_s12 }
  0x15   : > { %s212_s15 = sshll.u32 %s1767_s14, 4  ;;  %s1638_s18 = scalar_lea.hbm %s2073_s1, 6144  ;;  %s1875_s15 = int_to_ptr.vmem [resolvable:$true] %s212_s15 }
  0x16   : > { %p1871_p12 = pnand %p2079_p9, %p1581_p11  ;;  %p1639_p13 = scmp.ne.s32.totalorder %s2073_s1, %s1638_s18 }
  0x17   : > { %p1645_p3 = scmp.lt.u32.totalorder %s1638_s18, %s2073_s1 }
  0x18   : > { %p1640_p0 = pneg %p1871_p12 }
  0x1a   : > { %p1641_p1 = pnand %p1640_p0, %p1639_p13 }
  0x1c   : > { %p1642_p2 = pneg %p1641_p1 }
  0x1e   : > { %p1647_p4 = pnand %p1645_p3, %p1642_p2 }
  0x20   : > { %1650 = shalt.err (!%p1647_p4)
}
  0x21   : > { %s1651_s27 = scalar_lea.vmem %s197_s12, 6144  ;;  %p1659_p9 = scmp.lt.s32.totalorder %s197_s12, %s197_s12 }
  0x22   : > { %p1652_p7 = scmp.ne.s32.totalorder %s197_s12, %s1651_s27  ;;  %p1660_p6 = scmp.lt.s32.totalorder %s1651_s27, %s1651_s27 }
  0x24   : > { %p1654_p8 = pnand %p1652_p7, %p1640_p0  ;;  %p1661_p5 = por %p1660_p6, %p1659_p9 }
  0x26   : > { %p1655_p11 = pneg %p1654_p8 }
  0x28   : > { %p1662_p10 = pnand %p1661_p5, %p1655_p11 }
  0x2a   : > { %1665 = shalt.err (!%p1662_p10)
}
  0x2b   : > { %s1768_s29 = smov 128   ;;  %s1769_s30 = smov 8  }
  0x2c   : > { %1584 = dma.hbm_to_vmem [thread:$0]  (!%p1871_p12), %s2073_s1, 6144, %s197_s12, [#allocation4], %s1768_s29, %s1768_s29, %s1769_s30  }
  0x2d   : > { %s1666_s18 = scalar_lea.hbm %s2075_s3, 6144 }
  0x2e   : > { %p1667_p13 = scmp.ne.s32.totalorder %s2075_s3, %s1666_s18  ;;  %p1673_p9 = scmp.lt.u32.totalorder %s1666_s18, %s2075_s3 }
  0x30   : > { %p1669_p5 = pnand %p1667_p13, %p1640_p0 }
  0x32   : > { %p1670_p6 = pneg %p1669_p5 }
  0x34   : > { %p1675_p10 = pnand %p1673_p9, %p1670_p6 }
  0x36   : > { %1678 = shalt.err (!%p1675_p10)
}
  0x37   : > { %s1679_s12 = scalar_lea.vmem %s1875_s15, 6144  ;;  %p1687_p4 = scmp.lt.s32.totalorder %s1875_s15, %s1875_s15 }
  0x38   : > { %p1680_p1 = scmp.ne.s32.totalorder %s1875_s15, %s1679_s12  ;;  %p1688_p7 = scmp.lt.s32.totalorder %s1679_s12, %s1679_s12 }
  0x3a   : > { %p1682_p2 = pnand %p1680_p1, %p1640_p0  ;;  %p1689_p8 = por %p1688_p7, %p1687_p4 }
  0x3c   : > { %p1683_p3 = pneg %p1682_p2 }
  0x3e   : > { %p1690_p11 = pnand %p1689_p8, %p1683_p3 }
  0x40   : > { %1693 = shalt.err (!%p1690_p11)
}
  0x41   : > { %1587 = dma.hbm_to_vmem [thread:$0]  (!%p1871_p12), %s2075_s3, 6144, %s1875_s15, [#allocation7], %s1768_s29, %s1768_s29, %s1769_s30  }
  0x42   : > { %p2086_p13 = scmp.ne.s32.totalorder %s2084_s10, 0 }
  0x43   : > { %p2087_p5 = scmp.eq.s32.totalorder (!%p2086_p13), %s1835_s5, 0 }
  0x44   : > { %242 = sbr.rel (%p2086_p13) target bundleno = 636 (0x27c), region = 44 }
  0x4b   : > { %1739 = dma.done.wait (%p2087_p5), [#allocation4], 6144   ;;  %p2088_p0 = pmov %p2087_p5 }
  0x4d   : > { %1741 = vsyncadd (%p2088_p0), [#allocation4], 4294961152  ;;  %p2089_p6 = pmov %p2088_p0 }
  0x4e   : > { %p2090_p9 = pmov %p2088_p0 }
  0x4f   : > { %1743 = dma.done.wait (%p2089_p6), [#allocation7], 6144  }
  0x50   : > { %1745 = vsyncadd (%p2090_p9), [#allocation7], 4294961152  ;;  %v1770_v0 = vmov 0.0|0.0   ;;  %vm1771_vm0 = vmmov 0   ;;  %v1772_v1 = vmov 0.0   ;;  %v301_v2 = vld [vmem:[#allocation3 + $0x80] sm:$0xff] }
  0x51   : > { %1398 = vmatprep.subr.bf16.mxu0 %v1770_v0  ;;  %1422 = vmatprep.subr.bf16.mxu1 %v1770_v0  ;;  %v302_v3 = vld [vmem:[#allocation3 + $0x88] sm:$0xff]  ;;  %v284_v4 = vld [vmem:[#allocation3] sm:$0xff]  ;;  %v303_v7 = vld [vmem:[#allocation3 + $0x90] sm:$0xff]  ;;  %p276_p12 = scmp.lt.s32.totalorder %s1835_s5, 1  ;;  %vm320_vm1 = vcmask 1046528   ;;  %vm506_vm2 = vcmask 1045504  }
  0x52   : > { %1202 = vmatprep.mubr.msk.f32.mxu0 %vm1771_vm0, %v1772_v1  ;;  %1243 = vmatprep.mubr.msk.f32.mxu1 %vm1771_vm0, %v1772_v1  ;;  %v1399_v5 = vpack.c.bf16 %v302_v3, %v301_v2  ;;  %v285_v6 = vld [vmem:[#allocation3 + $0x8] sm:$0xff]  ;;  %v304_v8 = vld [vmem:[#allocation3 + $0x98] sm:$0xff]  ;;  %v286_v10 = vld [vmem:[#allocation3 + $0x10] sm:$0xff]  ;;  %s608_s14 = sld [smem:[#allocation2]]  ;;  %s273_s18 = sand.u32 1, %s1756_s24  }
  0x53   : > { %v1423_v9 = vpack.c.bf16 %v285_v6, %v284_v4  ;;  %v287_v11 = vld [vmem:[#allocation3 + $0x18] sm:$0xff]  ;;  %v1402_v12 = vpack.c.bf16 %v304_v8, %v303_v7  ;;  %v305_v14 = vld [vmem:[#allocation3 + $0xa0] sm:$0xff]  ;;  %v306_v15 = vld [vmem:[#allocation3 + $0xa8] sm:$0xff]  ;;  %s277_s10 = scalar_select %p276_p12, %s1835_s5, 1 }
  0x54   : > { %1400 = vmatpush3.bf16.msra.mxu0 %v1399_v5  ;;  %v1426_v13 = vpack.c.bf16 %v287_v11, %v286_v10  ;;  %v288_v16 = vld [vmem:[#allocation3 + $0x20] sm:$0xff]  ;;  %v289_v17 = vld [vmem:[#allocation3 + $0x28] sm:$0xff]  ;;  %v1405_v18 = vpack.c.bf16 %v306_v15, %v305_v14  ;;  %v307_v20 = vld [vmem:[#allocation3 + $0xb0] sm:$0xff]  ;;  %s1048_s19 = sshll.u32 %s273_s18, 4  ;;  %s1058_s27 = sshll.u32 %s1835_s5, 8 }
  0x55   : > { %1424 = vmatpush3.bf16.msra.mxu1 %v1423_v9  ;;  %1401 = vmatprep.subr.bf16.mxu0 %v1770_v0  ;;  %v1429_v19 = vpack.c.bf16 %v289_v17, %v288_v16  ;;  %v308_v21 = vld [vmem:[#allocation3 + $0xb8] sm:$0xff]  ;;  %v290_v22 = vld [vmem:[#allocation3 + $0x30] sm:$0xff]  ;;  %v309_v26 = vld [vmem:[#allocation3 + $0xc0] sm:$0xff]  ;;  %s1570_s13 = smul.u32 24, %s277_s10  ;;  %s275_s22 = scalar_lea.vmem [#allocation8], %s1048_s19 }
  0x56   : > { %1425 = vmatprep.subr.bf16.mxu1 %v1770_v0  ;;  %v291_v23 = vld [vmem:[#allocation3 + $0x38] sm:$0xff]  ;;  %v1408_v24 = vpack.c.bf16 %v308_v21, %v307_v20  ;;  %v310_v27 = vld [vmem:[#allocation3 + $0xc8] sm:$0xff]  ;;  %v292_v28 = vld [vmem:[#allocation3 + $0x40] sm:$0xff]  ;;  %s956_s12 = sshll.u32 %s275_s22, 4  ;;  %s2031_s15 = scalar_lea.sflag [#allocation5], %s273_s18  ;;  %s2023_s12 = int_to_ptr.vmem [resolvable:$true] %s956_s12 }
  0x57   : > { %v1432_v25 = vpack.c.bf16 %v291_v23, %v290_v22  ;;  %v293_v29 = vld [vmem:[#allocation3 + $0x48] sm:$0xff]  ;;  %v1411_v30 = vpack.c.bf16 %v310_v27, %v309_v26  ;;  %v311_v32 = vld [vmem:[#allocation3 + $0xd0] sm:$0xff]  ;;  %v312_v33 = vld [vmem:[#allocation3 + $0xd8] sm:$0xff]  ;;  %s280_s30 = scalar_lea.vmem %s2072_s0, %s1570_s13  ;;  %s2028_s13 = scalar_lea.hbm %s2078_s6, %s1058_s27 }
  0x58   : > { %1403 = vmatpush3.bf16.msra.mxu0 %v1402_v12  ;;  %v1435_v31 = vpack.c.bf16 %v293_v29, %v292_v28  ;;  %v294_v34 = vld [vmem:[#allocation3 + $0x50] sm:$0xff]  ;;  %v295_v35 = vld [vmem:[#allocation3 + $0x58] sm:$0xff]  ;;  %v1414_v36 = vpack.c.bf16 %v312_v33, %v311_v32  ;;  %v313_v38 = vld [vmem:[#allocation3 + $0xe0] sm:$0xff]  ;;  %s1694_s5 = scalar_lea.vmem %s2023_s12, 256  ;;  %p2091_p1 = scmp.ne.s32.totalorder %s2082_s8, 0 }
  0x59   : > { %1427 = vmatpush3.bf16.msra.mxu1 %v1426_v13  ;;  %1404 = vmatprep.subr.bf16.mxu0 %v1770_v0  ;;  %v1438_v37 = vpack.c.bf16 %v295_v35, %v294_v34  ;;  %v314_v39 = vld [vmem:[#allocation3 + $0xe8] sm:$0xff]  ;;  %v296_v40 = vld [vmem:[#allocation3 + $0x60] sm:$0xff]  ;;  %v315_v43 = vld [vmem:[#allocation3 + $0xf0] sm:$0xff]  ;;  %p1695_p10 = scmp.ne.s32.totalorder %s2023_s12, %s1694_s5  ;;  %s1773_s29 = smov [#allocation8]  }
  0x5a   : > { %1428 = vmatprep.subr.bf16.mxu1 %v1770_v0  ;;  %v297_v41 = vld [vmem:[#allocation3 + $0x68] sm:$0xff]  ;;  %v1417_v42 = vpack.c.bf16 %v314_v39, %v313_v38  ;;  %v316_v45 = vld [vmem:[#allocation3 + $0xf8] sm:$0xff]  ;;  %v1956_v46 = vld [vmem:[%s280_s30] sm:$0xff] }
  0x5b   : > { %v1441_v44 = vpack.c.bf16 %v297_v41, %v296_v40  ;;  %v1958_v47 = vld [vmem:[%s280_s30 + $0x8] sm:$0xff]  ;;  %v298_v48 = vld [vmem:[#allocation3 + $0x70] sm:$0xff]  ;;  %v299_v49 = vld [vmem:[#allocation3 + $0x78] sm:$0xff]  ;;  %v1420_v50 = vpack.c.bf16 %v316_v45, %v315_v43  ;;  %v321_v51 = vrot.slane %v1956_v46, 1  ;;  %v507_v20 = vrot.slane %v1956_v46, 2  ;;  %p1696_p2 = pnand %p1695_p10, %p2091_p1 }
  0x5c   : > { %1406 = vmatpush3.bf16.msra.mxu0 %v1405_v18  ;;  %v322_v52 = vrot.slane %v1958_v47, 1  ;;  %v1444_v53 = vpack.c.bf16 %v299_v49, %v298_v48  ;;  %v490_v54 = vld [vmem:[#allocation3 + $0x100] sm:$0xff]  ;;  %v491_v55 = vld [vmem:[#allocation3 + $0x108] sm:$0xff]  ;;  %v1964_v56 = vld [vmem:[%s280_s30 + $0x10] sm:$0xf]  ;;  %v508_v21 = vrot.slane %v1958_v47, 2 }
  0x5d   : > { %1430 = vmatpush3.bf16.msra.mxu1 %v1429_v19  ;;  %1407 = vmatprep.subr.bf16.mxu0 %v1770_v0  ;;  %v1447_v58 = vpack.c.bf16 %v491_v55, %v490_v54  ;;  %v324_v59 = vrot.slane %v1964_v56, 1  ;;  %v492_v60 = vld [vmem:[#allocation3 + $0x110] sm:$0xff]  ;;  %v493_v61 = vld [vmem:[#allocation3 + $0x118] sm:$0xff]  ;;  %v494_v2 = vld [vmem:[#allocation3 + $0x120] sm:$0xff]  ;;  %v510_v23 = vrot.slane %v1964_v56, 2  ;;  %p1697_p3 = pneg %p1696_p2  ;;  %s1698_s30 = sshll.u32 %s1773_s29, 4  ;;  %s1699_s30 = int_to_ptr.vmem [resolvable:$false] %s1698_s30 }
  0x5e   : > { %1431 = vmatprep.subr.bf16.mxu1 %v1770_v0  ;;  %v323_v57 = vsel %vm320_vm1, %v321_v51, %v322_v52  ;;  %v1450_v62 = vpack.c.bf16 %v493_v61, %v492_v60  ;;  %v495_v3 = vld [vmem:[#allocation3 + $0x128] sm:$0xff]  ;;  %v496_v5 = vld [vmem:[#allocation3 + $0x130] sm:$0xff]  ;;  %v497_v6 = vld [vmem:[#allocation3 + $0x138] sm:$0xff]  ;;  %v1994_v22 = vsel %vm506_vm2, %v507_v20, %v508_v21  ;;  %p1701_p4 = scmp.lt.s32.totalorder %s2023_s12, %s1699_s30 }
  0x5f   : > { %v325_v63 = vsel %vm320_vm1, %v322_v52, %v324_v59  ;;  %v1453_v4 = vpack.c.bf16 %v495_v3, %v494_v2  ;;  %v1456_v7 = vpack.c.bf16 %v497_v6, %v496_v5  ;;  %v498_v8 = vld [vmem:[#allocation3 + $0x140] sm:$0xff]  ;;  %v499_v9 = vld [vmem:[#allocation3 + $0x148] sm:$0xff]  ;;  %v500_v11 = vld [vmem:[#allocation3 + $0x150] sm:$0xff] }
  0x60   : > { %1409 = vmatpush3.bf16.msra.mxu0 %v1408_v24  ;;  %v1459_v10 = vpack.c.bf16 %v499_v9, %v498_v8  ;;  %v501_v12 = vld [vmem:[#allocation3 + $0x158] sm:$0xff]  ;;  %v502_v14 = vld [vmem:[#allocation3 + $0x160] sm:$0xff]  ;;  %v503_v15 = vld [vmem:[#allocation3 + $0x168] sm:$0xff]  ;;  %v2001_v24 = vsel %vm506_vm2, %v508_v21, %v510_v23 }
  0x61   : > { %1433 = vmatpush3.bf16.msra.mxu1 %v1432_v25  ;;  %1410 = vmatprep.subr.bf16.mxu0 %v1770_v0  ;;  %v1462_v13 = vpack.c.bf16 %v501_v12, %v500_v11  ;;  %v1465_v16 = vpack.c.bf16 %v503_v15, %v502_v14  ;;  %v504_v17 = vld [vmem:[#allocation3 + $0x170] sm:$0xff]  ;;  %v505_v18 = vld [vmem:[#allocation3 + $0x178] sm:$0xff]  ;;  %v636_v25 = vld [vmem:[#allocation6 + $0x8] sm:$0xff] }
  0x62   : > { %1434 = vmatprep.subr.bf16.mxu1 %v1770_v0  ;;  %v1468_v19 = vpack.c.bf16 %v505_v18, %v504_v17  ;;  %v637_v26 = vld [vmem:[#allocation6 + $0x10] sm:$0xff]  ;;  %v638_v28 = vld [vmem:[#allocation6 + $0x18] sm:$0xff]  ;;  %v639_v29 = vld [vmem:[#allocation6 + $0x20] sm:$0xff] }
  0x63   : > { %v652_v32 = vld [vmem:[#allocation6 + $0x80] sm:$0xff]  ;;  %v653_v33 = vld [vmem:[#allocation6 + $0x88] sm:$0xff]  ;;  %v654_v35 = vld [vmem:[#allocation6 + $0x90] sm:$0xff] }
  0x64   : > { %1412 = vmatpush3.bf16.msra.mxu0 %v1411_v30  ;;  %v1506_v30 = vpack.c.bf16 %v638_v28, %v637_v26  ;;  %v1470_v34 = vpack.c.bf16 %v653_v33, %v652_v32  ;;  %v641_v38 = vld [vmem:[#allocation6 + $0x30] sm:$0xff]  ;;  %v642_v39 = vld [vmem:[#allocation6 + $0x38] sm:$0xff]  ;;  %v656_v40 = vld [vmem:[#allocation6 + $0xa0] sm:$0xff]  ;;  %v619_v28 = vlaneseq }
  0x65   : > { %1436 = vmatpush3.bf16.msra.mxu1 %v1435_v31  ;;  %1413 = vmatprep.subr.bf16.mxu0 %v1770_v0  ;;  %v640_v31 = vld [vmem:[#allocation6 + $0x28] sm:$0xff]  ;;  %v646_v48 = vld [vmem:[#allocation6 + $0x58] sm:$0xff]  ;;  %v829_v3 = vld [vmem:[#allocation6 + $0x100] sm:$0xff] }
  0x66   : > { %1437 = vmatprep.subr.bf16.mxu1 %v1770_v0  ;;  %v657_v41 = vld [vmem:[#allocation6 + $0xa8] sm:$0xff]  ;;  %v659_v51 = vld [vmem:[#allocation6 + $0xb8] sm:$0xff]  ;;  %v664_v6 = vld [vmem:[#allocation6 + $0xe0] sm:$0xff]  ;;  %v620_v33 = vshrl.u32 %v619_v28, 7 }
  0x67   : > { %v1478_v43 = vpack.c.bf16 %v657_v41, %v656_v40  ;;  %v644_v45 = vld [vmem:[#allocation6 + $0x48] sm:$0xff]  ;;  %v650_v60 = vld [vmem:[#allocation6 + $0x78] sm:$0xff]  ;;  %v666_v9 = vld [vmem:[#allocation6 + $0xf0] sm:$0xff] }
  0x68   : > { %1415 = vmatpush3.bf16.msra.mxu0 %v1414_v36  ;;  %v655_v36 = vld [vmem:[#allocation6 + $0x98] sm:$0xff]  ;;  %v648_v54 = vld [vmem:[#allocation6 + $0x68] sm:$0xff]  ;;  %vm623_vm4 = vcmp.ge.s32.totalorder %v620_v33, 1  ;;  %v831_v41 = vld [vmem:[#allocation6 + $0x110] sm:$0xff] }
  0x69   : > { %1439 = vmatpush3.bf16.msra.mxu1 %v1438_v37  ;;  %1416 = vmatprep.subr.bf16.mxu0 %v1770_v0  ;;  %v1510_v37 = vpack.c.bf16 %v640_v31, %v639_v29 }
  0x6a   : > { %1440 = vmatprep.subr.bf16.mxu1 %v1770_v0 }
  0x6c   : > { %1418 = vmatpush3.bf16.msra.mxu0 %v1417_v42  ;;  %v1514_v42 = vpack.c.bf16 %v642_v39, %v641_v38 }
  0x6d   : > { %1442 = vmatpush3.bf16.msra.mxu1 %v1441_v44  ;;  %1419 = vmatprep.subr.bf16.mxu0 %v1770_v0  ;;  %v643_v44 = vld [vmem:[#allocation6 + $0x40] sm:$0xff] }
  0x6e   : > { %1443 = vmatprep.subr.bf16.mxu1 %v1770_v0 }
  0x70   : > { %1421 = vmatpush3.bf16.msra.mxu0 %v1420_v50  ;;  %v658_v50 = vld [vmem:[#allocation6 + $0xb0] sm:$0xff] }
  0x71   : > { %1445 = vmatpush3.bf16.msra.mxu1 %v1444_v53  ;;  %1446 = vmatprep.subr.bf16.mxu0 %v1770_v0  ;;  %v1482_v52 = vpack.c.bf16 %v659_v51, %v658_v50  ;;  %v647_v53 = vld [vmem:[#allocation6 + $0x60] sm:$0xff] }
  0x72   : > { %v1526_v55 = vpack.c.bf16 %v648_v54, %v647_v53  ;;  %v834_v53 = vld [vmem:[#allocation6 + $0x128] sm:$0xff] }
  0x73   : > { %1203 = vmatmul.mubr.f32.vlgmr.msra.gmra.mrb[0].mxu0 %v323_v57  ;;  %v661_v57 = vld [vmem:[#allocation6 + $0xc8] sm:$0xff] }
  0x74   : > { %1244 = vmatmul.mubr.f32.vlgmr.msra.gmra.mrb[0].mxu1 %v1956_v46  ;;  %1448 = vmatpush3.bf16.msra.mxu0 %v1447_v58  ;;  %v1518_v46 = vpack.c.bf16 %v644_v45, %v643_v44  ;;  %v622_v44 = vadd.s32 16, %v620_v33 }
  0x75   : > { %1449 = vmatprep.subr.bf16.mxu0 %v1770_v0  ;;  %1205 = vmatprep.mubr.msk.f32.mxu0 %vm1771_vm0, %v1772_v1 }
  0x76   : > { %1246 = vmatprep.mubr.msk.f32.mxu1 %vm1771_vm0, %v1772_v1  ;;  %vm628_vm7 = vcmp.lt.s32.totalorder %v622_v44, 17 }
  0x77   : > { %1206 = vmatmul.mubr.f32.gmra.mrb[2].mxu0 %v325_v63  ;;  %v663_v63 = vld [vmem:[#allocation6 + $0xd8] sm:$0xff] }
  0x78   : > { %1451 = vmatpush3.bf16.msra.mxu0 %v1450_v62  ;;  %1247 = vmatmul.mubr.f32.gmra.mrb[2].mxu1 %v1958_v47  ;;  %v645_v47 = vld [vmem:[#allocation6 + $0x50] sm:$0xff] }
  0x79   : > { %1452 = vmatprep.subr.bf16.mxu0 %v1770_v0  ;;  %1208 = vmatprep.mubr.msk.f32.mxu0 %vm1771_vm0, %v1772_v1  ;;  %v1522_v49 = vpack.c.bf16 %v646_v48, %v645_v47  ;;  %v662_v62 = vld [vmem:[#allocation6 + $0xd0] sm:$0xff] }
  0x7a   : > { %1249 = vmatprep.mubr.msk.f32.mxu1 %vm1771_vm0, %v1772_v1  ;;  %v1490_v2 = vpack.c.bf16 %v663_v63, %v662_v62  ;;  %v835_v63 = vld [vmem:[#allocation6 + $0x130] sm:$0xff] }
  0x7b   : > { %1209 = vmatmul.mubr.f32.gmra.mrb[4].mxu0 %v324_v59  ;;  %v649_v59 = vld [vmem:[#allocation6 + $0x70] sm:$0xff] }
  0x7c   : > { %1454 = vmatpush3.bf16.msra.mxu0 %v1453_v4  ;;  %1250 = vmatmul.mubr.f32.gmra.mrb[4].mxu1 %v1964_v56  ;;  %v660_v56 = vld [vmem:[#allocation6 + $0xc0] sm:$0xff]  ;;  %v1530_v61 = vpack.c.bf16 %v650_v60, %v649_v59  ;;  %v830_v4 = vld [vmem:[#allocation6 + $0x108] sm:$0xff] }
  0x7d   : > { %1455 = vmatprep.subr.bf16.mxu0 %v1770_v0  ;;  %1284 = vmatprep.mubr.msk.f32.mxu0 %vm1771_vm0, %v1772_v1  ;;  %v1486_v58 = vpack.c.bf16 %v661_v57, %v660_v56  ;;  %v2006_v5 = vpack.c.bf16 %v830_v4, %v829_v3 }
  0x80   : > { %1457 = vmatpush3.bf16.msra.mxu0 %v1456_v7  ;;  %v665_v7 = vld [vmem:[#allocation6 + $0xe8] sm:$0xff] }
  0x81   : > { %1458 = vmatprep.subr.bf16.mxu0 %v1770_v0  ;;  %v1494_v8 = vpack.c.bf16 %v665_v7, %v664_v6 }
  0x84   : > { %1460 = vmatpush3.bf16.msra.mxu0 %v1459_v10  ;;  %v667_v10 = vld [vmem:[#allocation6 + $0xf8] sm:$0xff] }
  0x85   : > { %1461 = vmatprep.subr.bf16.mxu0 %v1770_v0  ;;  %v1498_v11 = vpack.c.bf16 %v667_v10, %v666_v9  ;;  %v838_v9 = vld [vmem:[#allocation6 + $0x148] sm:$0xff] }
  0x88   : > { %1463 = vmatpush3.bf16.msra.mxu0 %v1462_v13 }
  0x89   : > { %1464 = vmatprep.subr.bf16.mxu0 %v1770_v0 }
  0x8c   : > { %1466 = vmatpush3.bf16.msra.mxu0 %v1465_v16 }
  0x8d   : > { %1467 = vmatprep.subr.bf16.mxu0 %v1770_v0  ;;  %v635_v0 = vld [vmem:[#allocation6] sm:$0xff] }
  0x8e   : > { %v1502_v27 = vpack.c.bf16 %v636_v25, %v635_v0 }
  0x90   : > { %1469 = vmatpush3.bf16.msra.mxu0 %v1468_v19  ;;  %1503 = vmatprep.subr.bf16.mxu1 %v1502_v27 }
  0x91   : > { %1505 = vmatpush3.bf16.msra.mxu1 %v1502_v27  ;;  %1471 = vmatprep.subr.bf16.mxu0 %v1470_v34 }
  0x92   : > { %1507 = vmatprep.subr.bf16.mxu1 %v1506_v30 }
  0x93   : > { %1285 = vmatmul.mubr.f32.vlgmr.msra.gmra.mrb[6].mxu0 %v1994_v22 }
  0x94   : > { %1287 = vmatprep.mubr.msk.f32.mxu0 %vm1771_vm0, %v1772_v1  ;;  %1473 = vmatpush3.bf16.msra.mxu0 %v1470_v34  ;;  %v612_v34 = vstv %s608_s14  ;;  %s1700_s14 = scalar_lea.vmem %s1699_s30, 512 }
  0x95   : > { %1509 = vmatpush3.bf16.msra.mxu1 %v1506_v30  ;;  %v1050_v30 = vld [vmem:[%s2074_s2] ss:$0 sm:$0xff]  ;;  %p1702_p7 = scmp.lt.s32.totalorder %s1700_s14, %s1694_s5 }
  0x96   : > { %1511 = vmatprep.subr.bf16.mxu1 %v1510_v37 }
  0x97   : > { %1288 = vmatmul.mubr.f32.gmra.mrb[8].mxu0 %v2001_v24  ;;  %p1703_p8 = por %p1702_p7, %p1701_p4 }
  0x98   : > { %1290 = vmatprep.mubr.msk.f32.mxu0 %vm1771_vm0, %v1772_v1  ;;  %v1474_v1 = vpack.c.bf16 %v655_v36, %v654_v35 }
  0x99   : > { %1513 = vmatpush3.bf16.msra.mxu1 %v1510_v37  ;;  %p1704_p11 = pnand %p1703_p8, %p1697_p3 }
  0x9a   : > { %1475 = vmatprep.subr.bf16.mxu0 %v1474_v1  ;;  %1515 = vmatprep.subr.bf16.mxu1 %v1514_v42 }
  0x9b   : > { %1291 = vmatmul.mubr.f32.gmra.mrb[10].mxu0 %v510_v23 }
  0x9c   : > { %1477 = vmatpush3.bf16.msra.mxu0 %v1474_v1 }
  0x9d   : > { %1479 = vmatprep.subr.bf16.mxu0 %v1478_v43  ;;  %1517 = vmatpush3.bf16.msra.mxu1 %v1514_v42  ;;  %v832_v42 = vld [vmem:[#allocation6 + $0x118] sm:$0xff] }
  0x9e   : > { %1519 = vmatprep.subr.bf16.mxu1 %v1518_v46 }
  0xa0   : > { %1481 = vmatpush3.bf16.msra.mxu0 %v1478_v43 }
  0xa1   : > { %1521 = vmatpush3.bf16.msra.mxu1 %v1518_v46  ;;  %1483 = vmatprep.subr.bf16.mxu0 %v1482_v52 }
  0xa2   : > { %1523 = vmatprep.subr.bf16.mxu1 %v1522_v49 }
  0xa4   : > { %1485 = vmatpush3.bf16.msra.mxu0 %v1482_v52  ;;  %v833_v52 = vld [vmem:[#allocation6 + $0x120] sm:$0xff] }
  0xa5   : > { %1525 = vmatpush3.bf16.msra.mxu1 %v1522_v49  ;;  %1487 = vmatprep.subr.bf16.mxu0 %v1486_v58  ;;  %v1538_v49 = vpack.c.bf16 %v832_v42, %v831_v41 }
  0xa6   : > { %1527 = vmatprep.subr.bf16.mxu1 %v1526_v55 }
  0xa8   : > { %1489 = vmatpush3.bf16.msra.mxu0 %v1486_v58 }
  0xa9   : > { %1529 = vmatpush3.bf16.msra.mxu1 %v1526_v55  ;;  %1491 = vmatprep.subr.bf16.mxu0 %v1490_v2 }
  0xaa   : > { %1531 = vmatprep.subr.bf16.mxu1 %v1530_v61 }
  0xac   : > { %1493 = vmatpush3.bf16.msra.mxu0 %v1490_v2  ;;  %v836_v2 = vld [vmem:[#allocation6 + $0x138] sm:$0xff] }
  0xad   : > { %1533 = vmatpush3.bf16.msra.mxu1 %v1530_v61  ;;  %1495 = vmatprep.subr.bf16.mxu0 %v1494_v8  ;;  %v1542_v61 = vpack.c.bf16 %v834_v53, %v833_v52  ;;  %v1546_v7 = vpack.c.bf16 %v836_v2, %v835_v63 }
  0xae   : > { %1535 = vmatprep.subr.bf16.mxu1 %v2006_v5 }
  0xb0   : > { %1497 = vmatpush3.bf16.msra.mxu0 %v1494_v8 }
  0xb1   : > { %1499 = vmatprep.subr.bf16.mxu0 %v1498_v11 }
  0xb4   : > { %1501 = vmatpush3.bf16.msra.mxu0 %v1498_v11 }
 0x146   : > { %v395_v12 = vpop.f32.mrb[0].mxu0 }
 0x147   : > { %v1204_v13 = vpop.f32.mrb[1].mxu0  ;;  %v475_v14 = vpop.f32.mrb[0].mxu1 }
 0x148   : > { %v476_v15 = vadd.f32 %v475_v14, %v395_v12  ;;  %v1245_v16 = vpop.f32.mrb[1].mxu1  ;;  %v839_v12 = vld [vmem:[#allocation6 + $0x150] sm:$0xff]  ;;  %v840_v13 = vld [vmem:[#allocation6 + $0x158] sm:$0xff] }
 0x149   : > { %v1554_v14 = vpack.c.bf16 %v840_v13, %v839_v12  ;;  %v842_v16 = vld [vmem:[#allocation6 + $0x168] sm:$0xff] }
 0x14a   : > { %v400_v17 = vpop.f32.mrb[2].mxu0 }
 0x14b   : > { %v1207_v18 = vpop.f32.mrb[3].mxu0  ;;  %v480_v19 = vpop.f32.mrb[2].mxu1 }
 0x14c   : > { %v481_v20 = vadd.f32 %v480_v19, %v400_v17  ;;  %v1248_v21 = vpop.f32.mrb[3].mxu1  ;;  %v843_v18 = vld [vmem:[#allocation6 + $0x170] sm:$0xff]  ;;  %v844_v19 = vld [vmem:[#allocation6 + $0x178] sm:$0xff] }
 0x14e   : > { %v405_v23 = vpop.f32.mrb[4].mxu0 }
 0x14f   : > { %v1210_v0 = vpop.f32.mrb[5].mxu0  ;;  %v485_v25 = vpop.f32.mrb[4].mxu1 }
 0x150   : > { %v486_v26 = vadd.f32 %v485_v25, %v405_v23  ;;  %v1251_v27 = vpop.f32.mrb[5].mxu1  ;;  %v1052_v25 = vld [vmem:[%s2076_s4] ss:$0 sm:$0xff] }
 0x166   : > { %v581_v29 = vpop.f32.mrb[6].mxu0 }
 0x167   : > { %v595_v31 = vadd.f32 %v581_v29, %v476_v15  ;;  %v1286_v32 = vpop.f32.mrb[7].mxu0  ;;  %v841_v15 = vld [vmem:[#allocation6 + $0x160] sm:$0xff] }
 0x168   : > { %v1558_v17 = vpack.c.bf16 %v842_v16, %v841_v15 }
 0x169   : > { %v605_v35 = vadd.f32 %v1050_v30, %v595_v31 }
 0x16a   : > { %v586_v36 = vpop.f32.mrb[8].mxu0 }
 0x16b   : > { %v613_v37 = vmul.f32 %v612_v34, %v605_v35  ;;  %v596_v1 = vadd.f32 %v586_v36, %v481_v20  ;;  %v1289_v38 = vpop.f32.mrb[9].mxu0  ;;  %vm609_vm3 = vcmp.ge.f32.partialorder %v605_v35, 0.0  ;;  %v1562_v20 = vpack.c.bf16 %v844_v19, %v843_v18 }
 0x16d   : > { %v606_v39 = vadd.f32 %v1050_v30, %v596_v1  ;;  %v616_v40 = vsel %vm609_vm3, %v605_v35, %v613_v37 }
 0x16e   : > { %v591_v43 = vpop.f32.mrb[10].mxu0  ;;  %1360 = vmatprep.mubr.msk.f32.mxu1 %vm623_vm4, %v616_v40  ;;  %v632_v47 = vsel %vm623_vm4, %v616_v40, 0.0 }
 0x16f   : > { %vm610_vm5 = vcmp.ge.f32.partialorder %v606_v39, 0.0  ;;  %v614_v45 = vmul.f32 %v612_v34, %v606_v39  ;;  %v597_v46 = vadd.f32 %v591_v43, %v486_v26  ;;  %v1292_v48 = vpop.f32.mrb[11].mxu0  ;;  %v671_v54 = vrot.slane %v632_v47, 1 }
 0x170   : > { %v845_v55 = vrot.slane %v632_v47, 2 }
 0x171   : > { %v607_v50 = vadd.f32 %v1050_v30, %v597_v46  ;;  %v617_v51 = vsel %vm610_vm5, %v606_v39, %v614_v45 }
 0x172   : > { %1361 = vmatmul.mubr.f32.vlgmr.msra.gmra.mrb[6].mxu1 %v617_v51  ;;  %v672_v56 = vrot.slane %v617_v51, 1  ;;  %v846_v57 = vrot.slane %v617_v51, 2 }
 0x173   : > { %vm611_vm6 = vcmp.ge.f32.partialorder %v607_v50, 0.0  ;;  %v615_v58 = vmul.f32 %v612_v34, %v607_v50  ;;  %1537 = vmatpush3.bf16.msra.mxu1 %v2006_v5  ;;  %v837_v5 = vld [vmem:[#allocation6 + $0x140] sm:$0xff] }
 0x174   : > { %v673_v59 = vsel %vm320_vm1, %v671_v54, %v672_v56  ;;  %1539 = vmatprep.subr.bf16.mxu1 %v1538_v49  ;;  %v847_v60 = vsel %vm506_vm2, %v845_v55, %v846_v57  ;;  %v1550_v11 = vpack.c.bf16 %v838_v9, %v837_v5 }
 0x175   : > { %v618_v62 = vsel %vm611_vm6, %v607_v50, %v615_v58  ;;  %1325 = vmatprep.mubr.f32.mxu0 %v673_v59  ;;  %1395 = vmatprep.mubr.f32.mxu1 %v847_v60 }
 0x176   : > { %v634_v3 = vsel %vm628_vm7, %v618_v62, 0.0 }
 0x177   : > { %v674_v4 = vrot.slane %v634_v3, 1  ;;  %1541 = vmatpush3.bf16.msra.mxu1 %v1538_v49  ;;  %v848_v6 = vrot.slane %v634_v3, 2 }
 0x178   : > { %1543 = vmatprep.subr.bf16.mxu1 %v1542_v61 }
 0x179   : > { %v675_v8 = vsel %vm320_vm1, %v672_v56, %v674_v4  ;;  %v849_v10 = vsel %vm506_vm2, %v846_v57, %v848_v6 }
 0x17a   : > { %1326 = vmatmul.mubr.f32.vlgmr.msra.gmra.mrb[12].mxu0 %v675_v8 }
 0x17b   : > { %1545 = vmatpush3.bf16.msra.mxu1 %v1542_v61 }
 0x17c   : > { %1547 = vmatprep.subr.bf16.mxu1 %v1546_v7 }
 0x17f   : > { %1549 = vmatpush3.bf16.msra.mxu1 %v1546_v7 }
 0x180   : > { %1551 = vmatprep.subr.bf16.mxu1 %v1550_v11 }
 0x183   : > { %1553 = vmatpush3.bf16.msra.mxu1 %v1550_v11 }
 0x184   : > { %1555 = vmatprep.subr.bf16.mxu1 %v1554_v14 }
 0x187   : > { %1557 = vmatpush3.bf16.msra.mxu1 %v1554_v14 }
 0x188   : > { %1559 = vmatprep.subr.bf16.mxu1 %v1558_v17 }
 0x18b   : > { %1561 = vmatpush3.bf16.msra.mxu1 %v1558_v17 }
 0x18c   : > { %1563 = vmatprep.subr.bf16.mxu1 %v1562_v20 }
 0x18f   : > { %1565 = vmatpush3.bf16.msra.mxu1 %v1562_v20 }
 0x192   : > { %1396 = vmatmul.mubr.f32.vlgmr.msra.gmra.mrb[6].mxu1 %v849_v10 }
 0x24d   : > { %v1327_v21 = vpop.f32.mrb[12].mxu0 }
 0x24e   : > { %v744_v23 = vpop.f32.mrb[13].mxu0 }
 0x265   : > { %v1397_v0 = vpop.f32.mrb[6].mxu1 }
 0x266   : > { %v1566_v26 = vadd.f32 %v1397_v0, %v1327_v21  ;;  %v918_v27 = vpop.f32.mrb[7].mxu1 }
 0x267   : > { %v1567_v28 = vadd.f32 %v918_v27, %v744_v23 }
 0x268   : > { %v937_v29 = vadd.f32 %v1566_v26, %v1052_v25 }
 0x269   : > { %v936_v30 = vadd.f32 %v1567_v28, %v1052_v25 }
 0x26a   : > { %v939_v31 = vadd.f32 %v937_v29, %v2001_v24 }
 0x26b   : > { %v938_v32 = vadd.f32 %v936_v30, %v1994_v22 }
 0x26c   : > { %941 = vst [vmem:[%s275_s22 + $0x8] sm:$0xff] %v939_v31 }
 0x26d   : > { %940 = vst [vmem:[%s275_s22] sm:$0xff] %v938_v32 }
 0x26e   : > { %1707 = shalt.err (!%p1704_p11)
}
 0x26f   : > { %s1708_s16 = scalar_lea.hbm %s2028_s13, 256  ;;  %s1712_s19 = scalar_lea.hbm %s2078_s6, 512 }
 0x270   : > { %p1709_p13 = scmp.ne.s32.totalorder %s2028_s13, %s1708_s16  ;;  %p1713_p6 = scmp.lt.u32.totalorder %s2028_s13, %s2078_s6 }
 0x271   : > { %p1714_p9 = scmp.lt.u32.totalorder %s1712_s19, %s1708_s16  ;;  %p1716_p10 = scmp.lt.u32.totalorder %s1708_s16, %s2028_s13 }
 0x272   : > { %p1710_p5 = pnand %p1709_p13, %p2091_p1 }
 0x273   : > { %p1715_p12 = por %p1714_p9, %p1713_p6 }
 0x274   : > { %p1711_p0 = pneg %p1710_p5 }
 0x275   : > { %p1717_p2 = por %p1716_p10, %p1715_p12 }
 0x277   : > { %p1718_p3 = pnand %p1717_p2, %p1711_p0 }
 0x279   : > { %1721 = shalt.err (!%p1718_p3)
}
 0x27a   : > { %s1774_s22 = smov 128   ;;  %s1775_s27 = smov 8  }
 0x27b   : > { %1579 = dma.vmem_to_hbm [thread:$0]  (%p2091_p1), %s2023_s12, 256, %s2028_s13, %s2031_s15, %s1774_s22, %s1774_s22, %s1775_s27  }
 0x27c PF: > { %p1596_p4 = scmp.ge.s32.totalorder %s1764_s26, 2  ;;  %s971_s11 = sand.u32 1, %s1752_s23  }
 0x27d   : > { %p2092_p7 = scmp.ne.s32.totalorder %s2083_s9, 0  ;;  %s972_s10 = scalar_lea.sflag [#allocation5], %s971_s11 }
 0x27f   : > { %p1589_p8 = pnand %p1596_p4, %p2092_p7 }
 0x281   : > { %1747 = dma.done.wait (!%p1589_p8), %s972_s10, 256  }
 0x282   : > { %1749 = vsyncadd (!%p1589_p8), %s972_s10, 4294967040  ;;  %p19_p11 = scmp.ge.s32.totalorder %s1839_s28, 4   ;;  %s2093_s23 = smov %s1756_s24 }
 0x283   : > { %s2094_s24 = smov %s1760_s25  ;;  %s2095_s25 = smov %s1850_s7 }
 0x284   : > { %s2096_s26 = smov %s1839_s28  ;;  %21 = sbr.rel (!%p19_p11) target bundleno = 7 (0x7), region = 92 }
 0x28b   :  { %977 = vsyncpa [#allocation4], 1 }
 0x28c   :  { %979 = vsyncpa [#allocation4 + $0x1], 1 }
 0x28d   :  { %980 = vsyncpa [#allocation7], 1 }
 0x28e   :  { %981 = vsyncpa [#allocation5], 1 }
 0x28f   :  { %983 = vsyncpa [#allocation5 + $0x1], 1 }

</bundles_post_ra>
